<compile_context>
chip_gen: v7x
topology: tpu7x:2x2x1
jax: 0.10.0
libtpu: 0.0.40
codegen_flags: <defaults>
</compile_context>

<pallas_src>
import functools
import math

import jax
import jax.numpy as jnp
from jax.experimental import pallas as pl
from jax.experimental.pallas import tpu as pltpu


def _log_sigmoid(x):
    # numerically stable log(sigmoid(x)) = min(x, 0) - log1p(exp(-|x|))
    return jnp.minimum(x, 0.0) - jnp.log1p(jnp.exp(-jnp.abs(x)))


def _round_up(x, m):
    return ((x + m - 1) // m) * m


def _skipgram_kernel(num_neg, emb_dim, batch, block_b,
                     v_ref, u_ref, uhat_ref, out_ref):
    """One batch tile: masked per-tile partial sum of the SGNS loss terms.

    v_ref    : (TB, D)      input_emb[target]
    u_ref    : (TB, D)      output_emb[context]
    uhat_ref : (TB, K*D)    output_emb[negatives], K rows flattened on lanes
    out_ref  : (1, 1)       sum over valid rows of
                            logsigmoid(<u,v>) + logsigmoid(-sum_k <uhat_k,v>)
    """
    v = v_ref[...].astype(jnp.float32)                    # (TB, D)
    u = u_ref[...].astype(jnp.float32)                    # (TB, D)

    # positive term: <output_emb[context], input_emb[target]>
    pos_score = jnp.sum(u * v, axis=-1, keepdims=True)    # (TB, 1)

    # negative term: accumulate the K slabs on the VPU, reduce once on XLU.
    uh_sum = uhat_ref[:, 0:emb_dim].astype(jnp.float32)   # (TB, D)
    for k in range(1, num_neg):
        uh_sum = uh_sum + uhat_ref[:, k * emb_dim:(k + 1) * emb_dim].astype(
            jnp.float32)
    neg_score = jnp.sum(uh_sum * v, axis=-1, keepdims=True)   # (TB, 1)

    per_ex = _log_sigmoid(pos_score) + _log_sigmoid(-neg_score)   # (TB, 1)

    # Mask batch-padding rows and reduce to a single per-tile partial sum so
    # the writeback is 4 bytes per grid step (no narrow column stores).
    row = (pl.program_id(0) * block_b
           + jax.lax.broadcasted_iota(jnp.int32, (block_b, 1), 0))
    per_ex = jnp.where(row < batch, per_ex, 0.0)
    out_ref[...] = jnp.sum(per_ex, axis=0, keepdims=True)     # (1, 1)


def skipgram_neg_sampling_loss(w_in, w_out, target, context, negatives, *,
                               compute_dtype=None,
                               vmem_block_budget_bytes=32 * 1024 * 1024,
                               min_grid_steps=2):
    """Forward pass of NegativeSamplingSkipGram (returns the scalar loss)."""
    V, D = w_in.shape
    (B,) = target.shape
    _, K = negatives.shape
    assert K >= 1

    slab_dtype = (jnp.dtype(compute_dtype) if compute_dtype is not None
                  else jnp.dtype(w_in.dtype))
    itemsize = slab_dtype.itemsize

    # Lane-align the embedding dim: zero-pad columns to a multiple of 128 so
    # every in-kernel slab slice is lane-dense (dots are unchanged by zeros).
    Dp = _round_up(D, 128)

    # Dense pre-gather of embedding rows (XLA gather handles scattered rows;
    # the kernel then streams big contiguous tiles).
    v = jnp.take(w_in, target, axis=0).astype(slab_dtype)            # (B, D)
    u = jnp.take(w_out, context, axis=0).astype(slab_dtype)          # (B, D)
    u_hat = jnp.take(w_out, negatives.reshape(-1),
                     axis=0).astype(slab_dtype)                      # (B*K, D)
    if Dp != D:
        v = jnp.pad(v, ((0, 0), (0, Dp - D)))
        u = jnp.pad(u, ((0, 0), (0, Dp - D)))
        u_hat = jnp.pad(u_hat, ((0, 0), (0, Dp - D)))
    u_hat = u_hat.reshape(B, K * Dp)                                 # (B, K*Dp)

    # --- Tile sizing -------------------------------------------------------
    # Double-buffered per-row footprint of the three input blocks.
    bytes_per_row = 2 * (K + 2) * Dp * itemsize
    tb = max(8, (vmem_block_budget_bytes // max(bytes_per_row, 1)) // 8 * 8)
    tb = min(tb, _round_up(B, 8))
    # Ensure >= min_grid_steps grid iterations when possible so both v7x
    # TensorCores get work (no-op on single-core v5e/v6e).
    if B > 8 and min_grid_steps > 1:
        tb = min(tb, _round_up(pl.cdiv(B, min_grid_steps), 8))

    bp = _round_up(B, tb)
    pad = bp - B
    if pad:
        v = jnp.pad(v, ((0, pad), (0, 0)))
        u = jnp.pad(u, ((0, pad), (0, 0)))
        u_hat = jnp.pad(u_hat, ((0, pad), (0, 0)))
    num_tiles = bp // tb

    # Explicit scoped-VMEM limit: double-buffered inputs + output + headroom,
    # capped at v7x's 64 MiB per-TC physical VMEM.
    footprint = 2 * (K + 2) * tb * Dp * itemsize + 2 * 4096
    vmem_limit = int(min(max(footprint + (4 << 20), 16 << 20), 64 << 20))

    cost = pl.CostEstimate(
        flops=2 * (K + 1) * B * Dp + 8 * B,
        transcendentals=2 * B,
        bytes_accessed=(K + 2) * bp * Dp * itemsize + num_tiles * 4,
    )

    grid_spec = pltpu.PrefetchScalarGridSpec(
        num_scalar_prefetch=0,
        grid=(num_tiles,),
        in_specs=[
            pl.BlockSpec((tb, Dp), lambda i: (i, 0)),         # v
            pl.BlockSpec((tb, Dp), lambda i: (i, 0)),         # u
            pl.BlockSpec((tb, K * Dp), lambda i: (i, 0)),     # u_hat (flat)
        ],
        out_specs=pl.BlockSpec((1, 1), lambda i: (i, 0)),
    )

    partial_sums = pl.pallas_call(
        functools.partial(_skipgram_kernel, K, Dp, B, tb),
        out_shape=jax.ShapeDtypeStruct((num_tiles, 1), jnp.float32),
        grid_spec=grid_spec,
        compiler_params=pltpu.CompilerParams(
            dimension_semantics=("parallel",),
            vmem_limit_bytes=vmem_limit),
        cost_estimate=cost,
    )(v, u, u_hat)

    # loss = -(positive_val + neg_val).mean() over the real batch.
    return -(jnp.sum(partial_sums) / B)


def _reference_loss(w_in, w_out, target, context, negatives):
    v = w_in[target]                      # (B, D)
    u = w_out[context]                    # (B, D)
    u_hat = w_out[negatives]              # (B, K, D)
    pos = _log_sigmoid(jnp.sum(u * v, axis=1))
    neg_scores = jnp.einsum("bkd,bd->bk", u_hat, v)
    neg = _log_sigmoid(-jnp.sum(neg_scores, axis=1))
    return -jnp.mean(pos + neg)


def _run_case(vocab_size, embedding_dim, batch, num_negatives, key,
              rtol=1e-5, atol=1e-5, **kw):
    k_in, k_out, k_tgt, k_ctx, k_neg = jax.random.split(key, 5)

    # xavier_uniform_: U(-a, a), a = sqrt(6 / (fan_in + fan_out))
    bound = math.sqrt(6.0 / (vocab_size + embedding_dim))
    w_in = jax.random.uniform(k_in, (vocab_size, embedding_dim),
                              jnp.float32, -bound, bound)
    w_out = jax.random.uniform(k_out, (vocab_size, embedding_dim),
                               jnp.float32, -bound, bound)

    target = jax.random.randint(k_tgt, (batch,), 0, vocab_size, jnp.int32)
    context = jax.random.randint(k_ctx, (batch,), 0, vocab_size, jnp.int32)
    negatives = jax.random.randint(k_neg, (batch, num_negatives), 0,
                                   vocab_size, jnp.int32)

    loss = skipgram_neg_sampling_loss(w_in, w_out, target, context,
                                      negatives, **kw)
    loss = jax.block_until_ready(loss)

    ref = _reference_loss(w_in, w_out, target, context, negatives)
    assert jnp.allclose(loss, ref, rtol=rtol, atol=atol), (loss, ref)


if __name__ == "__main__":
    key = jax.random.PRNGKey(0)
    k1, k2, k3 = jax.random.split(key, 3)

    # Small shape matching the module's typical toy use (single tile).
    _run_case(vocab_size=64, embedding_dim=128, batch=8, num_negatives=4,
              key=k1)
    # Multi-tile case: odd batch (padding + mask), non-128-aligned D
    # (column padding), >=2 grid steps (v7x megacore path).
    _run_case(vocab_size=500, embedding_dim=200, batch=37, num_negatives=3,
              key=k2)
    # bf16 slab path: halves HBM read bytes; f32 accumulation in-kernel.
    _run_case(vocab_size=256, embedding_dim=128, batch=24, num_negatives=5,
              key=k3, compute_dtype=jnp.bfloat16, rtol=3e-2, atol=3e-2)

    print("KERNEL_OK")
</pallas_src>

<mosaic_0001>
module attributes {stable_mosaic.version = 11 : i64} {
  func.func @_skipgram_kernel(%arg0: i32, %arg1: memref<8x128xf32, #tpu.memory_space<vmem>>, %arg2: memref<8x128xf32, #tpu.memory_space<vmem>>, %arg3: memref<8x512xf32, #tpu.memory_space<vmem>>, %arg4: memref<1x1xf32, #tpu.memory_space<vmem>>) attributes {dimension_semantics = [#tpu.dimension_semantics<parallel>], iteration_bounds = array<i64: 1>, scalar_prefetch = 0 : i64, scratch_operands = 0 : i64, tpu.core_type = #tpu.core_type<tc>, window_params = [{transform_indices = @transform_0, window_bounds = array<i64: 8, 128>}, {transform_indices = @transform_1, window_bounds = array<i64: 8, 128>}, {transform_indices = @transform_2, window_bounds = array<i64: 8, 512>}, {transform_indices = @transform_3, window_bounds = array<i64: 1, 1>}]} {
    %c0 = arith.constant 0 : index
    %c0_0 = arith.constant 0 : index
    %0 = vector.load %arg1[%c0, %c0_0] : memref<8x128xf32, #tpu.memory_space<vmem>>, vector<8x128xf32>
    %c0_1 = arith.constant 0 : index
    %c0_2 = arith.constant 0 : index
    %1 = vector.load %arg2[%c0_1, %c0_2] : memref<8x128xf32, #tpu.memory_space<vmem>>, vector<8x128xf32>
    %2 = arith.mulf %1, %0 : vector<8x128xf32>
    %cst = arith.constant dense<0.000000e+00> : vector<8xf32>
    %3 = vector.multi_reduction <add>, %2, %cst [1] : vector<8x128xf32> to vector<8xf32>
    %4 = vector.shape_cast %3 : vector<8xf32> to vector<8x1xf32>
    %c0_3 = arith.constant 0 : index
    %c0_4 = arith.constant 0 : index
    %5 = vector.load %arg3[%c0_3, %c0_4] : memref<8x512xf32, #tpu.memory_space<vmem>>, vector<8x128xf32>
    %c0_5 = arith.constant 0 : index
    %c128 = arith.constant 128 : index
    %6 = vector.load %arg3[%c0_5, %c128] : memref<8x512xf32, #tpu.memory_space<vmem>>, vector<8x128xf32>
    %7 = arith.addf %5, %6 : vector<8x128xf32>
    %c0_6 = arith.constant 0 : index
    %c256 = arith.constant 256 : index
    %8 = vector.load %arg3[%c0_6, %c256] : memref<8x512xf32, #tpu.memory_space<vmem>>, vector<8x128xf32>
    %9 = arith.addf %7, %8 : vector<8x128xf32>
    %c0_7 = arith.constant 0 : index
    %c384 = arith.constant 384 : index
    %10 = vector.load %arg3[%c0_7, %c384] : memref<8x512xf32, #tpu.memory_space<vmem>>, vector<8x128xf32>
    %11 = arith.addf %9, %10 : vector<8x128xf32>
    %12 = arith.mulf %11, %0 : vector<8x128xf32>
    %cst_8 = arith.constant dense<0.000000e+00> : vector<8xf32>
    %13 = vector.multi_reduction <add>, %12, %cst_8 [1] : vector<8x128xf32> to vector<8xf32>
    %14 = vector.shape_cast %13 : vector<8xf32> to vector<8x1xf32>
    %cst_9 = arith.constant 0.000000e+00 : f32
    %15 = vector.broadcast %cst_9 : f32 to vector<8x1xf32>
    %16 = arith.minimumf %4, %15 : vector<8x1xf32>
    %17 = math.absf %4 : vector<8x1xf32>
    %cst_10 = arith.constant 0.000000e+00 : f32
    %18 = vector.broadcast %cst_10 : f32 to vector<8x1xf32>
    %19 = arith.subf %18, %17 : vector<8x1xf32>
    %20 = math.exp %19 : vector<8x1xf32>
    %21 = math.log1p %20 : vector<8x1xf32>
    %22 = arith.subf %16, %21 : vector<8x1xf32>
    %cst_11 = arith.constant 0.000000e+00 : f32
    %23 = vector.broadcast %cst_11 : f32 to vector<8x1xf32>
    %24 = arith.subf %23, %14 : vector<8x1xf32>
    %cst_12 = arith.constant 0.000000e+00 : f32
    %25 = vector.broadcast %cst_12 : f32 to vector<8x1xf32>
    %26 = arith.minimumf %24, %25 : vector<8x1xf32>
    %27 = math.absf %24 : vector<8x1xf32>
    %cst_13 = arith.constant 0.000000e+00 : f32
    %28 = vector.broadcast %cst_13 : f32 to vector<8x1xf32>
    %29 = arith.subf %28, %27 : vector<8x1xf32>
    %30 = math.exp %29 : vector<8x1xf32>
    %31 = math.log1p %30 : vector<8x1xf32>
    %32 = arith.subf %26, %31 : vector<8x1xf32>
    %33 = arith.addf %22, %32 : vector<8x1xf32>
    %c8_i32 = arith.constant 8 : i32
    %34 = arith.muli %arg0, %c8_i32 : i32
    %35 = tpu.iota {dimensions = array<i32: 0>} : vector<8x1xi32>
    %36 = vector.broadcast %34 : i32 to vector<8x1xi32>
    %37 = arith.addi %36, %35 : vector<8x1xi32>
    %c8_i32_14 = arith.constant 8 : i32
    %38 = vector.broadcast %c8_i32_14 : i32 to vector<8x1xi32>
    %39 = arith.cmpi slt, %37, %38 : vector<8x1xi32>
    %cst_15 = arith.constant 0.000000e+00 : f32
    %40 = vector.broadcast %cst_15 : f32 to vector<8x1xf32>
    %41 = arith.select %39, %33, %40 : vector<8x1xi1>, vector<8x1xf32>
    %cst_16 = arith.constant dense<0.000000e+00> : vector<1xf32>
    %42 = vector.multi_reduction <add>, %41, %cst_16 [0] : vector<8x1xf32> to vector<1xf32>
    %43 = vector.shape_cast %42 : vector<1xf32> to vector<1x1xf32>
    %c0_17 = arith.constant 0 : index
    %c0_18 = arith.constant 0 : index
    %44 = vector.load %arg4[%c0_17, %c0_18] : memref<1x1xf32, #tpu.memory_space<vmem>>, vector<1x1xf32>
    tpu.vector_store %arg4[%c0_17, %c0_18], %43 {strides = array<i32>} : memref<1x1xf32, #tpu.memory_space<vmem>>, vector<1x1xf32>,
    return
  }
  func.func @transform_0(%arg0: i32) -> (i32, i32) {
    %c0_i32 = arith.constant 0 : i32
    %c0_i32_0 = arith.constant 0 : i32
    return %arg0, %c0_i32 : i32, i32
  }
  func.func @transform_1(%arg0: i32) -> (i32, i32) {
    %c0_i32 = arith.constant 0 : i32
    %c0_i32_0 = arith.constant 0 : i32
    return %arg0, %c0_i32 : i32, i32
  }
  func.func @transform_2(%arg0: i32) -> (i32, i32) {
    %c0_i32 = arith.constant 0 : i32
    %c0_i32_0 = arith.constant 0 : i32
    return %arg0, %c0_i32 : i32, i32
  }
  func.func @transform_3(%arg0: i32) -> (i32, i32) {
    %c0_i32 = arith.constant 0 : i32
    %c0_i32_0 = arith.constant 0 : i32
    return %arg0, %c0_i32 : i32, i32
  }
}

</mosaic_0001>

<bundles_post_ra>
// kernel: tpu_custom_call.1
= control target key start
LH: loop header
LB: loop body
LE: loop exit
PB: predicated region body
PF: predicated region fallthrough
CT: control target
= control target key end

     0   :  { %8 = vsyncpa [#allocation3], 0  ;;  %s306_s0 = inlined_call_operand.hbm [shape: f32[8,128], index: 0, kind: input, shape index: {}]   ;;  %s307_s1 = inlined_call_operand.hbm [shape: f32[8,128], index: 1, kind: input, shape index: {}]   ;;  %s308_s2 = inlined_call_operand.hbm [shape: f32[8,512], index: 2, kind: input, shape index: {}]   ;;  %s309_s3 = inlined_call_operand.hbm [shape: f32[1,1], index: 3, kind: output, shape index: {}]  }
   0x1   :  { %9 = vsyncpa [#allocation6], 0 }
   0x2   :  { %10 = vsyncpa [#allocation4], 0  ;;  %s234_s12 = smov [#allocation5]   ;;  %s235_s14 = smov [#allocation2]  }
   0x3   :  { %s27_s13 = sshll.u32 %s234_s12, 4  ;;  %s17_s15 = sshll.u32 %s235_s14, 4  ;;  %s28_s13 = int_to_ptr.vmem [resolvable:$true] %s27_s13  ;;  %s18_s15 = int_to_ptr.vmem [resolvable:$true] %s17_s15 }
   0x4   :  { %s140_s18 = scalar_lea.hbm %s307_s1, 128 }
   0x5   :  { %p141_p0 = scmp.ne.s32.totalorder %s307_s1, %s140_s18  ;;  %p144_p1 = scmp.lt.u32.totalorder %s140_s18, %s307_s1 }
   0x7   :  { %p146_p2 = pnand %p144_p1, %p141_p0 }
   0x9   :  { %149 = shalt.err (!%p146_p2)
}
   0xa   :  { %s150_s23 = scalar_lea.vmem %s28_s13, 128  ;;  %p155_p4 = scmp.lt.s32.totalorder %s28_s13, %s28_s13 }
   0xb   :  { %p151_p3 = scmp.ne.s32.totalorder %s28_s13, %s150_s23  ;;  %p156_p5 = scmp.lt.s32.totalorder %s150_s23, %s150_s23 }
   0xd   :  { %p157_p6 = por %p156_p5, %p155_p4 }
   0xf   :  { %p158_p7 = pnand %p157_p6, %p151_p3 }
  0x11   :  { %161 = shalt.err (!%p158_p7)
}
  0x12   :  { %30 = dma.hbm_to_vmem [thread:$0]  %s307_s1, 128, %s28_s13, [#allocation6]  }
  0x13   :  { %s162_s28 = scalar_lea.hbm %s306_s0, 128 }
  0x14   :  { %p163_p8 = scmp.ne.s32.totalorder %s306_s0, %s162_s28  ;;  %p166_p9 = scmp.lt.u32.totalorder %s162_s28, %s306_s0 }
  0x16   :  { %p168_p10 = pnand %p166_p9, %p163_p8 }
  0x18   :  { %171 = shalt.err (!%p168_p10)
}
  0x19   :  { %s172_s6 = scalar_lea.vmem %s18_s15, 128  ;;  %p177_p12 = scmp.lt.s32.totalorder %s18_s15, %s18_s15 }
  0x1a   :  { %p173_p11 = scmp.ne.s32.totalorder %s18_s15, %s172_s6  ;;  %p178_p13 = scmp.lt.s32.totalorder %s172_s6, %s172_s6 }
  0x1c   :  { %p179_p0 = por %p178_p13, %p177_p12 }
  0x1e   :  { %p180_p1 = pnand %p179_p0, %p173_p11 }
  0x20   :  { %183 = shalt.err (!%p180_p1)
}
  0x21   :  { %20 = dma.hbm_to_vmem [thread:$0]  %s306_s0, 128, %s18_s15, [#allocation3]  }
  0x22   :  { %s236_s8 = smov [#allocation7]   ;;  %s184_s12 = scalar_lea.hbm %s308_s2, 512 }
  0x23   :  { %s37_s9 = sshll.u32 %s236_s8, 4  ;;  %p185_p2 = scmp.ne.s32.totalorder %s308_s2, %s184_s12  ;;  %s38_s9 = int_to_ptr.vmem [resolvable:$true] %s37_s9 }
  0x24   :  { %p188_p3 = scmp.lt.u32.totalorder %s184_s12, %s308_s2 }
  0x26   :  { %p190_p4 = pnand %p188_p3, %p185_p2 }
  0x28   :  { %193 = shalt.err (!%p190_p4)
}
  0x29   :  { %s194_s18 = scalar_lea.vmem %s38_s9, 512  ;;  %p199_p6 = scmp.lt.s32.totalorder %s38_s9, %s38_s9 }
  0x2a   :  { %p195_p5 = scmp.ne.s32.totalorder %s38_s9, %s194_s18  ;;  %p200_p7 = scmp.lt.s32.totalorder %s194_s18, %s194_s18 }
  0x2c   :  { %p201_p8 = por %p200_p7, %p199_p6 }
  0x2e   :  { %p202_p9 = pnand %p201_p8, %p195_p5 }
  0x30   :  { %205 = shalt.err (!%p202_p9)
}
  0x31   :  { %40 = dma.hbm_to_vmem [thread:$0]  %s308_s2, 512, %s38_s9, [#allocation6]  }
  0x32   :  { %228 = dma.done.wait [#allocation3], 128  }
  0x33   :  { %229 = vsyncadd [#allocation3], 4294967168 }
  0x34   :  { %230 = dma.done.wait [#allocation6], 640  }
  0x35   :  { %231 = vsyncadd [#allocation6], 4294966656  ;;  %v55_v0 = vld [vmem:[#allocation7] sm:$0xff]  ;;  %v56_v1 = vld [vmem:[#allocation7 + $0x8] sm:$0xff]  ;;  %s237_s2 = smov [#allocation8]   ;;  %vm110_vm2 = vcmask 0  }
  0x36   :  { %v57_v2 = vadd.f32 %v56_v1, %v55_v0  ;;  %v58_v3 = vld [vmem:[#allocation7 + $0x10] sm:$0xff]  ;;  %v60_v4 = vld [vmem:[#allocation7 + $0x18] sm:$0xff]  ;;  %s118_s19 = sshll.u32 %s237_s2, 4  ;;  %s119_s19 = int_to_ptr.vmem [resolvable:$true] %s118_s19 }
  0x37   :  { %v50_v6 = vld [vmem:[#allocation2] sm:$0xff]  ;;  %v51_v8 = vld [vmem:[#allocation5] sm:$0xff]  ;;  %s206_s20 = scalar_lea.vmem %s119_s19, 16  ;;  %s210_s21 = scalar_lea.vmem %s119_s19, 32 }
  0x38   :  { %v59_v5 = vadd.f32 %v58_v3, %v57_v2  ;;  %v52_v10 = vmul.f32 %v51_v8, %v50_v6  ;;  %p207_p10 = scmp.ne.s32.totalorder %s119_s19, %s206_s20  ;;  %p211_p11 = scmp.lt.s32.totalorder %s119_s19, %s119_s19 }
  0x39   :  { %p212_p12 = scmp.lt.s32.totalorder %s210_s21, %s206_s20 }
  0x3a   :  { %v61_v7 = vadd.f32 %v60_v4, %v59_v5 }
  0x3b   :  { %p213_p13 = por %p212_p12, %p211_p11 }
  0x3c   :  { %v62_v9 = vmul.f32 %v61_v7, %v50_v6 }
  0x3d   :  { %p214_p0 = pnand %p213_p13, %p207_p10 }
  0x3e   :  { %63 = vadd.xlane.f32.xlu0 %v62_v9 }
  0x42   :  { %53 = vadd.xlane.f32.xlu0 %v52_v10 }
  0xcb   :  { %v64_v11 = vpop.xlane.xlu0 %63 }
  0xcc   :  { %v80_v12 = vsub.f32 0.0, %v64_v11 }
  0xce   :  { %v82_v13 = vand.u32 2147483647, %v80_v12  ;;  %v81_v37 = vmin.f32 %v80_v12, 0.0 }
  0xcf   :  { %v54_v14 = vpop.xlane.xlu0 %53 }
  0xd0   :  { %v83_v15 = vsub.f32 0.0, %v82_v13  ;;  %v66_v16 = vand.u32 2147483647, %v54_v14  ;;  %v65_v38 = vmin.f32 %v54_v14, 0.0 }
  0xd2   :  { %v84_v17 = vmul.f32 1.442695, %v83_v15  ;;  %v67_v18 = vsub.f32 0.0, %v66_v16 }
  0xd4   :  { %132 = vpow2.f32 %v84_v17  ;;  %v68_v19 = vmul.f32 1.442695, %v67_v18 }
  0xd6   :  { %134 = vpow2.f32 %v68_v19 }
  0xde   :  { %v133_v20 = vpop.eup %132 }
  0xdf   :  { %v86_v21 = vadd.f32 1.0, %v133_v20  ;;  %v89_v24 = vmul.f32 -0.5, %v133_v20  ;;  %v92_v27 = vand.u32 2147483647, %v133_v20 }
  0xe0   :  { %v135_v22 = vpop.eup %134 }
  0xe1   :  { %136 = vlog2.f32 %v86_v21  ;;  %v70_v23 = vadd.f32 1.0, %v135_v22  ;;  %v73_v25 = vmul.f32 -0.5, %v135_v22  ;;  %v90_v26 = vadd.f32 1.0, %v89_v24 }
  0xe2   :  { %v76_v30 = vand.u32 2147483647, %v135_v22  ;;  %vm93_vm0 = vcmp.lt.f32.partialorder %v92_v27, 0.0004427343 }
  0xe3   :  { %138 = vlog2.f32 %v70_v23  ;;  %v74_v28 = vadd.f32 1.0, %v73_v25  ;;  %v91_v32 = vmul.f32 %v133_v20, %v90_v26 }
  0xe4   :  { %vm77_vm1 = vcmp.lt.f32.partialorder %v76_v30, 0.0004427343 }
  0xe5   :  { %v75_v36 = vmul.f32 %v135_v22, %v74_v28 }
  0xeb   :  { %v137_v29 = vpop.eup %136 }
  0xec   :  { %v88_v31 = vmul.f32 0.6931472, %v137_v29 }
  0xed   :  { %v139_v33 = vpop.eup %138 }
  0xee   :  { %v94_v34 = vsel %vm93_vm0, %v91_v32, %v88_v31  ;;  %v72_v35 = vmul.f32 0.6931472, %v139_v33 }
  0xef   :  { %v95_v40 = vsub.f32 %v81_v37, %v94_v34 }
  0xf0   :  { %v78_v39 = vsel %vm77_vm1, %v75_v36, %v72_v35 }
  0xf1   :  { %v79_v41 = vsub.f32 %v65_v38, %v78_v39 }
  0xf3   :  { %v96_v42 = vadd.f32 %v95_v40, %v79_v41 }
  0xf5   :  { %v104_v43 = vrot.slane %v96_v42, 4 }
  0xf7   :  { %v105_v44 = vadd.f32 %v104_v43, %v96_v42 }
  0xf9   :  { %v106_v45 = vrot.slane %v105_v44, 2 }
  0xfb   :  { %v107_v46 = vadd.f32 %v106_v45, %v105_v44 }
  0xfd   :  { %v108_v47 = vrot.slane %v107_v46, 1 }
  0xff   :  { %v109_v48 = vadd.f32 %v108_v47, %v107_v46 }
 0x101   :  { %111 = vst.msk [vmem:[#allocation8] sm:$0x1] %vm110_vm2, %v109_v48 }
 0x102   :  { %217 = shalt.err (!%p214_p0)
}
 0x103   :  { %s218_s24 = scalar_lea.hbm %s309_s3, 16 }
 0x104   :  { %p219_p1 = scmp.ne.s32.totalorder %s309_s3, %s218_s24  ;;  %p222_p2 = scmp.lt.u32.totalorder %s218_s24, %s309_s3 }
 0x106   :  { %p224_p3 = pnand %p222_p2, %p219_p1 }
 0x108   :  { %227 = shalt.err (!%p224_p3)
}
 0x109   :  { %121 = dma.vmem_to_hbm [thread:$0]  %s119_s19, 16, %s309_s3, [#allocation4]  }
 0x10a   :  { %232 = dma.done.wait [#allocation4], 16  }
 0x10b   :  { %233 = vsyncadd [#allocation4], 4294967280 }
 0x10c   :  { %125 = vsyncpa [#allocation3], 1 }
 0x10d   :  { %126 = vsyncpa [#allocation6], 1 }
 0x10e   :  { %127 = vsyncpa [#allocation4], 1 }

</bundles_post_ra>
